<compile_context>
chip_gen: v5e
topology: v5e:2x2
jax: 0.10.0
libtpu: 0.0.40
codegen_flags: <defaults>
</compile_context>

<pallas_src>
import functools

import jax
import jax.numpy as jnp
import numpy as np
from jax.experimental import pallas as pl
from jax.experimental.pallas import tpu as pltpu


def _roi_pool_kernel(bidx_ref, hstart_ref, hend_ref, wstart_ref, wend_ref,
                     x_ref, out_ref, rowmax_ref, *, pooled_h, pooled_w):
    """One grid step == one (channel-tile, ROI) pair.  ROIs are pre-sorted by
    batch index so the (H, W, CT) slab is only re-DMAed when the batch element
    (or channel tile) changes.

    x_ref:      (H, W, CT) feature slab of this ROI's batch element (VMEM).
    out_ref:    (PH*PW, CT) pooled output block (VMEM, flattened bins).
    rowmax_ref: (PH, W, CT) VMEM scratch with per-output-row maxima.
    Bin boundaries (scaled, rounded, clipped) arrive via SMEM scalar prefetch
    as (PH, K) / (PW, K) int32 arrays.  bidx_ref is only used by the index_map.
    """
    del bidx_ref
    k = pl.program_id(1)                       # ROI index (inner grid axis)
    dt = x_ref.dtype
    neg = jnp.array(-jnp.inf, dtype=dt)
    wdim = x_ref.shape[1]
    ct = x_ref.shape[2]

    # ---- Phase 1: for each output row bin ph, max over its H range.
    # Single pass: only rows [hstart, hend) are ever loaded, each ~once.
    def ph_body(ph_i, carry):
        hs = hstart_ref[ph_i, k]
        he = hend_ref[ph_i, k]

        def row_scan(h, acc):
            return jnp.maximum(acc, x_ref[h])          # (W, CT) plane

        acc0 = jnp.full((wdim, ct), neg, dt)
        rowmax_ref[ph_i] = jax.lax.fori_loop(hs, he, row_scan, acc0)
        return carry

    jax.lax.fori_loop(0, pooled_h, ph_body, 0)

    # ---- Phase 2: per (ph, pw) bin, masked max over the W range of the row
    # maxima.  Results assembled in vregs and stored once (lane/sublane-dense
    # store to the flattened (PH*PW, CT) block).  Empty bins come out as -inf
    # and are zeroed exactly in the wrapper.
    w_iota = jax.lax.broadcasted_iota(jnp.int32, (wdim, 1), 0)   # (W, 1)
    masks = []
    for pw_i in range(pooled_w):                 # static; PW is small
        ws = wstart_ref[pw_i, k]
        we = wend_ref[pw_i, k]
        masks.append((w_iota >= ws) & (w_iota < we))             # (W, 1)

    pieces = []
    for ph_i in range(pooled_h):                 # static; PH is small
        rm = rowmax_ref[ph_i]                                    # (W, CT)
        for pw_i in range(pooled_w):
            pieces.append(jnp.max(jnp.where(masks[pw_i], rm, neg),
                                  axis=0, keepdims=True))        # (1, CT)
    out_ref[...] = jnp.concatenate(pieces, axis=0).astype(out_ref.dtype)
    # TODO(synk): argmax indices (needed only for backward) are not produced.


def roi_pool(x_nchw, rois, spatial_scale, output_size):
    if isinstance(output_size, int):
        output_size = (output_size, output_size)
    ph, pw = int(output_size[0]), int(output_size[1])
    N, C, H, W = x_nchw.shape
    K = rois.shape[0]

    if not jnp.issubdtype(x_nchw.dtype, jnp.floating):
        x_nchw = x_nchw.astype(jnp.float32)
    dtype = x_nchw.dtype

    # NHWC: channels on the TPU lane axis; keep native dtype through the DMA.
    # TODO(synk): for v5e + bf16 inputs, benchmark casting loaded rows to f32
    # inside the kernel (no native bf16 VPU ops there).
    x_nhwc = jnp.transpose(x_nchw, (0, 2, 3, 1))

    rois = rois.astype(jnp.float32)
    batch_idx = rois[:, 0].astype(jnp.int32)

    # round-half-away-from-zero (C roundf); correct for negative coords too.
    def _roundf(v):
        return (jnp.sign(v) * jnp.floor(jnp.abs(v) + 0.5)).astype(jnp.int32)

    rsw = _roundf(rois[:, 1] * spatial_scale)
    rsh = _roundf(rois[:, 2] * spatial_scale)
    rew = _roundf(rois[:, 3] * spatial_scale)
    reh = _roundf(rois[:, 4] * spatial_scale)

    bin_h = jnp.maximum(reh - rsh + 1, 1).astype(jnp.float32) / float(ph)
    bin_w = jnp.maximum(rew - rsw + 1, 1).astype(jnp.float32) / float(pw)

    ph_idx = jnp.arange(ph, dtype=jnp.float32)[:, None]   # (PH, 1)
    pw_idx = jnp.arange(pw, dtype=jnp.float32)[:, None]   # (PW, 1)

    # Bin boundaries precomputed once; long K axis last (cheap SMEM padding).
    hstart = jnp.clip(jnp.floor(ph_idx * bin_h).astype(jnp.int32) + rsh, 0, H)        # (PH, K)
    hend = jnp.clip(jnp.ceil((ph_idx + 1.0) * bin_h).astype(jnp.int32) + rsh, 0, H)   # (PH, K)
    wstart = jnp.clip(jnp.floor(pw_idx * bin_w).astype(jnp.int32) + rsw, 0, W)        # (PW, K)
    wend = jnp.clip(jnp.ceil((pw_idx + 1.0) * bin_w).astype(jnp.int32) + rsw, 0, W)   # (PW, K)

    # Sort ROIs by batch index so consecutive grid steps share the same slab
    # block index (Pallas skips the HBM->VMEM DMA when it does not change).
    order = jnp.argsort(batch_idx)          # stable
    inv_order = jnp.argsort(order)
    bidx_s = batch_idx[order]
    hstart_s = hstart[:, order]
    hend_s = hend[:, order]
    wstart_s = wstart[:, order]
    wend_s = wend[:, order]

    # ---- Channel tiling + VMEM budgeting (respect physical VMEM; account for
    # slab buffers + rowmax scratch + double-buffered output block). ----
    itemsize = jnp.dtype(dtype).itemsize
    sub = {4: 8, 2: 16, 1: 32}.get(itemsize, 8)

    def _pad(v, m):
        return ((v + m - 1) // m) * m

    def _need(ct_, slab_bufs_):
        ct_p = _pad(ct_, 128)
        w_p = _pad(W, sub)
        slab = H * w_p * ct_p * itemsize
        rowmax = ph * w_p * ct_p * itemsize
        outblk = _pad(ph * pw, sub) * ct_p * itemsize
        return slab_bufs_ * slab + rowmax + 2 * outblk

    try:
        phys_vmem = int(pltpu.get_tpu_info().vmem_capacity_bytes)
    except Exception:
        phys_vmem = 64 << 20          # conservative (v7x per-TensorCore)
    budget = phys_vmem - (4 << 20)    # headroom for compiler-internal scratch

    if C % 128 == 0:
        cands = [c for c in (512, 256, 128) if C % c == 0]
    else:
        cands = [C]   # TODO(synk): for C < 128, fold W into the lane axis for density.

    ct, slab_bufs = cands[-1], 1
    chosen = False
    for bufs in (2, 1):
        for cand in cands:
            if _need(cand, bufs) <= budget:
                ct, slab_bufs = cand, bufs
                chosen = True
                break
        if chosen:
            break
    # TODO(synk): if even a single-buffered 128-channel slab exceeds VMEM (huge
    # FPN maps), block the H axis or DMA only the ROI's row range via pl.ANY +
    # make_async_copy.  TODO(synk): consider processing a small block of
    # same-batch ROIs per grid step to amortize per-step overhead.

    need = _need(ct, slab_bufs)
    vmem_limit = int(min(phys_vmem - (2 << 20), max(need + (4 << 20), 32 << 20)))

    n_ctiles = C // ct
    kernel = functools.partial(_roi_pool_kernel, pooled_h=ph, pooled_w=pw)

    slab_kwargs = {}
    if slab_bufs == 1:
        # Slab changes only on batch-index / channel-tile changes thanks to the
        # sort, so single-buffering it rarely exposes DMA latency.
        slab_kwargs["pipeline_mode"] = pl.Buffered(1)

    out_flat = pl.pallas_call(
        kernel,
        out_shape=jax.ShapeDtypeStruct((K, ph * pw, C), dtype),
        grid_spec=pltpu.PrefetchScalarGridSpec(
            num_scalar_prefetch=5,       # bidx, hstart, hend, wstart, wend
            grid=(n_ctiles, K),          # K innermost: batch-sorted slab reuse
            in_specs=[
                # One (H, W, CT) channel-tile slab of the ROI's batch element.
                pl.BlockSpec((None, H, W, ct),
                             lambda c, k, b, hs, he, ws, we: (b[k], 0, 0, c),
                             **slab_kwargs),
            ],
            out_specs=pl.BlockSpec((None, ph * pw, ct),
                                   lambda c, k, b, hs, he, ws, we: (k, 0, c)),
            scratch_shapes=[pltpu.VMEM((ph, W, ct), dtype)],
        ),
        compiler_params=pltpu.CompilerParams(
            dimension_semantics=("parallel", "parallel"),
            vmem_limit_bytes=vmem_limit),
    )(bidx_s, hstart_s, hend_s, wstart_s, wend_s, x_nhwc)

    out_sorted = out_flat.reshape(K, ph, pw, C)
    out_nhwc = out_sorted[inv_order]             # un-permute ROIs

    # Empty bins are exactly zero in the reference; the kernel leaves -inf for
    # fully-masked bins, so zero them here with the exact empty mask.
    empty = (hend <= hstart).T[:, :, None] | (wend <= wstart).T[:, None, :]  # (K, PH, PW)
    out_nhwc = jnp.where(empty[..., None], jnp.zeros((), dtype), out_nhwc)

    return jnp.transpose(out_nhwc, (0, 3, 1, 2))  # (K, C, PH, PW)


class ROIPool:
    """Mirror of the PyTorch module (forward only)."""

    def __init__(self, spatial_scale, output_size):
        self.spatial_scale = spatial_scale
        self.output_size = output_size

    def __call__(self, inputs, rois):
        return roi_pool(inputs, rois, self.spatial_scale, self.output_size)


def _roi_pool_reference(x_nchw, rois, spatial_scale, output_size):
    """Pure numpy reference mirroring torchvision roi_pool_forward."""
    x = np.asarray(x_nchw, dtype=np.float32)
    rois = np.asarray(rois, dtype=np.float32)
    N, C, H, W = x.shape
    K = rois.shape[0]
    ph, pw = output_size
    out = np.zeros((K, C, ph, pw), dtype=np.float32)

    def roundf(v):  # round half away from zero (C roundf)
        return int(np.floor(abs(v) + 0.5) * (1.0 if v >= 0 else -1.0))

    for k in range(K):
        b = int(rois[k, 0])
        rsw = roundf(rois[k, 1] * spatial_scale)
        rsh = roundf(rois[k, 2] * spatial_scale)
        rew = roundf(rois[k, 3] * spatial_scale)
        reh = roundf(rois[k, 4] * spatial_scale)
        rw = max(rew - rsw + 1, 1)
        rh = max(reh - rsh + 1, 1)
        bh = rh / ph
        bw = rw / pw
        for i in range(ph):
            hs = min(max(int(np.floor(i * bh)) + rsh, 0), H)
            he = min(max(int(np.ceil((i + 1) * bh)) + rsh, 0), H)
            for j in range(pw):
                ws = min(max(int(np.floor(j * bw)) + rsw, 0), W)
                we = min(max(int(np.ceil((j + 1) * bw)) + rsw, 0), W)
                if he <= hs or we <= ws:
                    out[k, :, i, j] = 0.0
                else:
                    out[k, :, i, j] = x[b, :, hs:he, ws:we].max(axis=(1, 2))
    return out


if __name__ == "__main__":
    key = jax.random.PRNGKey(0)
    N, C, H, W = 2, 4, 16, 16
    spatial_scale = 0.5
    output_size = (4, 4)

    x = jax.random.normal(key, (N, C, H, W), dtype=jnp.float32)
    # (batch_idx, x1, y1, x2, y2) in unscaled coordinates.  Batch indices are
    # deliberately interleaved (exercises the sort/un-sort path) and the last
    # ROI extends past the image (exercises clipping + empty-bin zeroing).
    rois = jnp.array([[0.0, 0.0, 0.0, 20.0, 20.0],
                      [1.0, 4.0, 4.0, 28.0, 28.0],
                      [0.0, 10.0, 2.0, 30.0, 24.0],
                      [1.0, 22.0, 0.0, 40.0, 30.0]], dtype=jnp.float32)

    pool = ROIPool(spatial_scale, output_size)
    out = jax.block_until_ready(pool(x, rois))

    ref = _roi_pool_reference(np.asarray(x), np.asarray(rois),
                              spatial_scale, output_size)
    np.testing.assert_allclose(np.asarray(out), ref, rtol=1e-6, atol=1e-6)
    print("KERNEL_OK")
</pallas_src>

<mosaic_0001>
module attributes {stable_mosaic.version = 11 : i64} {
  func.func @_roi_pool_kernel(%arg0: i32, %arg1: i32, %arg2: memref<4xi32, #tpu.memory_space<smem>>, %arg3: memref<4x4xi32, #tpu.memory_space<smem>>, %arg4: memref<4x4xi32, #tpu.memory_space<smem>>, %arg5: memref<4x4xi32, #tpu.memory_space<smem>>, %arg6: memref<4x4xi32, #tpu.memory_space<smem>>, %arg7: memref<1x16x16x4xf32, #tpu.memory_space<vmem>>, %arg8: memref<1x16x4xf32, #tpu.memory_space<vmem>>, %arg9: memref<4x16x4xf32, #tpu.memory_space<vmem>>) attributes {dimension_semantics = [#tpu.dimension_semantics<parallel>, #tpu.dimension_semantics<parallel>], iteration_bounds = array<i64: 1, 4>, scalar_prefetch = 5 : i64, scratch_operands = 1 : i64, tpu.core_type = #tpu.core_type<tc>, window_params = [{transform_indices = @transform_0, window_bounds = array<i64: 1, 16, 16, 4>}, {transform_indices = @transform_1, window_bounds = array<i64: 1, 16, 4>}]} {
    %cst = arith.constant 0xFF800000 : f32
    %c0_i32 = arith.constant 0 : i32
    %c4_i32 = arith.constant 4 : i32
    %0 = arith.addi %c0_i32, %c4_i32 : i32
    %c1_i32 = arith.constant 1 : i32
    scf.for %arg10 = %c0_i32 to %0 step %c1_i32  : i32 {
      %146 = arith.index_cast %arg10 : i32 to index
      %147 = arith.index_cast %arg1 : i32 to index
      %148 = memref.load %arg3[%146, %147] : memref<4x4xi32, #tpu.memory_space<smem>>
      %149 = arith.index_cast %arg10 : i32 to index
      %150 = arith.index_cast %arg1 : i32 to index
      %151 = memref.load %arg4[%149, %150] : memref<4x4xi32, #tpu.memory_space<smem>>
      %152 = vector.broadcast %cst : f32 to vector<16x4xf32>
      %153 = arith.subi %151, %148 : i32
      %154 = arith.addi %148, %153 : i32
      %c1_i32_52 = arith.constant 1 : i32
      %155 = scf.for %arg11 = %148 to %154 step %c1_i32_52 iter_args(%arg12 = %152) -> (vector<16x4xf32>)  : i32 {
        %c0_55 = arith.constant 0 : index
        %160 = arith.index_cast %arg11 : i32 to index
        %c0_56 = arith.constant 0 : index
        %c0_57 = arith.constant 0 : index
        %161 = vector.load %arg7[%c0_55, %160, %c0_56, %c0_57] : memref<1x16x16x4xf32, #tpu.memory_space<vmem>>, vector<1x1x16x4xf32>
        %162 = vector.shape_cast %161 : vector<1x1x16x4xf32> to vector<16x4xf32>
        %163 = arith.maximumf %arg12, %162 : vector<16x4xf32>
        scf.yield %163 : vector<16x4xf32>
      }
      %156 = arith.index_cast %arg10 : i32 to index
      %c0_53 = arith.constant 0 : index
      %c0_54 = arith.constant 0 : index
      %157 = vector.load %arg9[%156, %c0_53, %c0_54] : memref<4x16x4xf32, #tpu.memory_space<vmem>>, vector<1x16x4xf32>
      %158 = vector.shape_cast %157 : vector<1x16x4xf32> to vector<16x4xf32>
      %159 = vector.shape_cast %155 : vector<16x4xf32> to vector<1x16x4xf32>
      tpu.vector_store %arg9[%156, %c0_53, %c0_54], %159 {strides = array<i32>} : memref<4x16x4xf32, #tpu.memory_space<vmem>>, vector<1x16x4xf32>,
    }
    %c4_i32_0 = arith.constant 4 : i32
    %1 = tpu.iota {dimensions = array<i32: 0>} : vector<16x1xi32>
    %c0 = arith.constant 0 : index
    %2 = arith.index_cast %arg1 : i32 to index
    %3 = memref.load %arg5[%c0, %2] : memref<4x4xi32, #tpu.memory_space<smem>>
    %c0_1 = arith.constant 0 : index
    %4 = arith.index_cast %arg1 : i32 to index
    %5 = memref.load %arg6[%c0_1, %4] : memref<4x4xi32, #tpu.memory_space<smem>>
    %6 = vector.broadcast %3 : i32 to vector<16x1xi32>
    %7 = arith.cmpi sge, %1, %6 : vector<16x1xi32>
    %8 = vector.broadcast %5 : i32 to vector<16x1xi32>
    %9 = arith.cmpi slt, %1, %8 : vector<16x1xi32>
    %10 = arith.andi %7, %9 : vector<16x1xi1>
    %c1 = arith.constant 1 : index
    %11 = arith.index_cast %arg1 : i32 to index
    %12 = memref.load %arg5[%c1, %11] : memref<4x4xi32, #tpu.memory_space<smem>>
    %c1_2 = arith.constant 1 : index
    %13 = arith.index_cast %arg1 : i32 to index
    %14 = memref.load %arg6[%c1_2, %13] : memref<4x4xi32, #tpu.memory_space<smem>>
    %15 = vector.broadcast %12 : i32 to vector<16x1xi32>
    %16 = arith.cmpi sge, %1, %15 : vector<16x1xi32>
    %17 = vector.broadcast %14 : i32 to vector<16x1xi32>
    %18 = arith.cmpi slt, %1, %17 : vector<16x1xi32>
    %19 = arith.andi %16, %18 : vector<16x1xi1>
    %c2 = arith.constant 2 : index
    %20 = arith.index_cast %arg1 : i32 to index
    %21 = memref.load %arg5[%c2, %20] : memref<4x4xi32, #tpu.memory_space<smem>>
    %c2_3 = arith.constant 2 : index
    %22 = arith.index_cast %arg1 : i32 to index
    %23 = memref.load %arg6[%c2_3, %22] : memref<4x4xi32, #tpu.memory_space<smem>>
    %24 = vector.broadcast %21 : i32 to vector<16x1xi32>
    %25 = arith.cmpi sge, %1, %24 : vector<16x1xi32>
    %26 = vector.broadcast %23 : i32 to vector<16x1xi32>
    %27 = arith.cmpi slt, %1, %26 : vector<16x1xi32>
    %28 = arith.andi %25, %27 : vector<16x1xi1>
    %c3 = arith.constant 3 : index
    %29 = arith.index_cast %arg1 : i32 to index
    %30 = memref.load %arg5[%c3, %29] : memref<4x4xi32, #tpu.memory_space<smem>>
    %c3_4 = arith.constant 3 : index
    %31 = arith.index_cast %arg1 : i32 to index
    %32 = memref.load %arg6[%c3_4, %31] : memref<4x4xi32, #tpu.memory_space<smem>>
    %33 = vector.broadcast %30 : i32 to vector<16x1xi32>
    %34 = arith.cmpi sge, %1, %33 : vector<16x1xi32>
    %35 = vector.broadcast %32 : i32 to vector<16x1xi32>
    %36 = arith.cmpi slt, %1, %35 : vector<16x1xi32>
    %37 = arith.andi %34, %36 : vector<16x1xi1>
    %c0_5 = arith.constant 0 : index
    %c0_6 = arith.constant 0 : index
    %c0_7 = arith.constant 0 : index
    %38 = vector.load %arg9[%c0_5, %c0_6, %c0_7] : memref<4x16x4xf32, #tpu.memory_space<vmem>>, vector<1x16x4xf32>
    %39 = vector.shape_cast %38 : vector<1x16x4xf32> to vector<16x4xf32>
    %cst_8 = arith.constant 0xFF800000 : f32
    %40 = vector.shape_cast %10 : vector<16x1xi1> to vector<16x1xi1>
    %41 = vector.broadcast %40 : vector<16x1xi1> to vector<16x4xi1>
    %42 = vector.broadcast %cst_8 : f32 to vector<16x4xf32>
    %43 = arith.select %41, %39, %42 : vector<16x4xi1>, vector<16x4xf32>
    %cst_9 = arith.constant dense<0xFF800000> : vector<4xf32>
    %44 = vector.multi_reduction <maximumf>, %43, %cst_9 [0] : vector<16x4xf32> to vector<4xf32>
    %45 = vector.shape_cast %44 : vector<4xf32> to vector<1x4xf32>
    %cst_10 = arith.constant 0xFF800000 : f32
    %46 = vector.shape_cast %19 : vector<16x1xi1> to vector<16x1xi1>
    %47 = vector.broadcast %46 : vector<16x1xi1> to vector<16x4xi1>
    %48 = vector.broadcast %cst_10 : f32 to vector<16x4xf32>
    %49 = arith.select %47, %39, %48 : vector<16x4xi1>, vector<16x4xf32>
    %cst_11 = arith.constant dense<0xFF800000> : vector<4xf32>
    %50 = vector.multi_reduction <maximumf>, %49, %cst_11 [0] : vector<16x4xf32> to vector<4xf32>
    %51 = vector.shape_cast %50 : vector<4xf32> to vector<1x4xf32>
    %cst_12 = arith.constant 0xFF800000 : f32
    %52 = vector.shape_cast %28 : vector<16x1xi1> to vector<16x1xi1>
    %53 = vector.broadcast %52 : vector<16x1xi1> to vector<16x4xi1>
    %54 = vector.broadcast %cst_12 : f32 to vector<16x4xf32>
    %55 = arith.select %53, %39, %54 : vector<16x4xi1>, vector<16x4xf32>
    %cst_13 = arith.constant dense<0xFF800000> : vector<4xf32>
    %56 = vector.multi_reduction <maximumf>, %55, %cst_13 [0] : vector<16x4xf32> to vector<4xf32>
    %57 = vector.shape_cast %56 : vector<4xf32> to vector<1x4xf32>
    %cst_14 = arith.constant 0xFF800000 : f32
    %58 = vector.shape_cast %37 : vector<16x1xi1> to vector<16x1xi1>
    %59 = vector.broadcast %58 : vector<16x1xi1> to vector<16x4xi1>
    %60 = vector.broadcast %cst_14 : f32 to vector<16x4xf32>
    %61 = arith.select %59, %39, %60 : vector<16x4xi1>, vector<16x4xf32>
    %cst_15 = arith.constant dense<0xFF800000> : vector<4xf32>
    %62 = vector.multi_reduction <maximumf>, %61, %cst_15 [0] : vector<16x4xf32> to vector<4xf32>
    %63 = vector.shape_cast %62 : vector<4xf32> to vector<1x4xf32>
    %c1_16 = arith.constant 1 : index
    %c0_17 = arith.constant 0 : index
    %c0_18 = arith.constant 0 : index
    %64 = vector.load %arg9[%c1_16, %c0_17, %c0_18] : memref<4x16x4xf32, #tpu.memory_space<vmem>>, vector<1x16x4xf32>
    %65 = vector.shape_cast %64 : vector<1x16x4xf32> to vector<16x4xf32>
    %cst_19 = arith.constant 0xFF800000 : f32
    %66 = vector.shape_cast %10 : vector<16x1xi1> to vector<16x1xi1>
    %67 = vector.broadcast %66 : vector<16x1xi1> to vector<16x4xi1>
    %68 = vector.broadcast %cst_19 : f32 to vector<16x4xf32>
    %69 = arith.select %67, %65, %68 : vector<16x4xi1>, vector<16x4xf32>
    %cst_20 = arith.constant dense<0xFF800000> : vector<4xf32>
    %70 = vector.multi_reduction <maximumf>, %69, %cst_20 [0] : vector<16x4xf32> to vector<4xf32>
    %71 = vector.shape_cast %70 : vector<4xf32> to vector<1x4xf32>
    %cst_21 = arith.constant 0xFF800000 : f32
    %72 = vector.shape_cast %19 : vector<16x1xi1> to vector<16x1xi1>
    %73 = vector.broadcast %72 : vector<16x1xi1> to vector<16x4xi1>
    %74 = vector.broadcast %cst_21 : f32 to vector<16x4xf32>
    %75 = arith.select %73, %65, %74 : vector<16x4xi1>, vector<16x4xf32>
    %cst_22 = arith.constant dense<0xFF800000> : vector<4xf32>
    %76 = vector.multi_reduction <maximumf>, %75, %cst_22 [0] : vector<16x4xf32> to vector<4xf32>
    %77 = vector.shape_cast %76 : vector<4xf32> to vector<1x4xf32>
    %cst_23 = arith.constant 0xFF800000 : f32
    %78 = vector.shape_cast %28 : vector<16x1xi1> to vector<16x1xi1>
    %79 = vector.broadcast %78 : vector<16x1xi1> to vector<16x4xi1>
    %80 = vector.broadcast %cst_23 : f32 to vector<16x4xf32>
    %81 = arith.select %79, %65, %80 : vector<16x4xi1>, vector<16x4xf32>
    %cst_24 = arith.constant dense<0xFF800000> : vector<4xf32>
    %82 = vector.multi_reduction <maximumf>, %81, %cst_24 [0] : vector<16x4xf32> to vector<4xf32>
    %83 = vector.shape_cast %82 : vector<4xf32> to vector<1x4xf32>
    %cst_25 = arith.constant 0xFF800000 : f32
    %84 = vector.shape_cast %37 : vector<16x1xi1> to vector<16x1xi1>
    %85 = vector.broadcast %84 : vector<16x1xi1> to vector<16x4xi1>
    %86 = vector.broadcast %cst_25 : f32 to vector<16x4xf32>
    %87 = arith.select %85, %65, %86 : vector<16x4xi1>, vector<16x4xf32>
    %cst_26 = arith.constant dense<0xFF800000> : vector<4xf32>
    %88 = vector.multi_reduction <maximumf>, %87, %cst_26 [0] : vector<16x4xf32> to vector<4xf32>
    %89 = vector.shape_cast %88 : vector<4xf32> to vector<1x4xf32>
    %c2_27 = arith.constant 2 : index
    %c0_28 = arith.constant 0 : index
    %c0_29 = arith.constant 0 : index
    %90 = vector.load %arg9[%c2_27, %c0_28, %c0_29] : memref<4x16x4xf32, #tpu.memory_space<vmem>>, vector<1x16x4xf32>
    %91 = vector.shape_cast %90 : vector<1x16x4xf32> to vector<16x4xf32>
    %cst_30 = arith.constant 0xFF800000 : f32
    %92 = vector.shape_cast %10 : vector<16x1xi1> to vector<16x1xi1>
    %93 = vector.broadcast %92 : vector<16x1xi1> to vector<16x4xi1>
    %94 = vector.broadcast %cst_30 : f32 to vector<16x4xf32>
    %95 = arith.select %93, %91, %94 : vector<16x4xi1>, vector<16x4xf32>
    %cst_31 = arith.constant dense<0xFF800000> : vector<4xf32>
    %96 = vector.multi_reduction <maximumf>, %95, %cst_31 [0] : vector<16x4xf32> to vector<4xf32>
    %97 = vector.shape_cast %96 : vector<4xf32> to vector<1x4xf32>
    %cst_32 = arith.constant 0xFF800000 : f32
    %98 = vector.shape_cast %19 : vector<16x1xi1> to vector<16x1xi1>
    %99 = vector.broadcast %98 : vector<16x1xi1> to vector<16x4xi1>
    %100 = vector.broadcast %cst_32 : f32 to vector<16x4xf32>
    %101 = arith.select %99, %91, %100 : vector<16x4xi1>, vector<16x4xf32>
    %cst_33 = arith.constant dense<0xFF800000> : vector<4xf32>
    %102 = vector.multi_reduction <maximumf>, %101, %cst_33 [0] : vector<16x4xf32> to vector<4xf32>
    %103 = vector.shape_cast %102 : vector<4xf32> to vector<1x4xf32>
    %cst_34 = arith.constant 0xFF800000 : f32
    %104 = vector.shape_cast %28 : vector<16x1xi1> to vector<16x1xi1>
    %105 = vector.broadcast %104 : vector<16x1xi1> to vector<16x4xi1>
    %106 = vector.broadcast %cst_34 : f32 to vector<16x4xf32>
    %107 = arith.select %105, %91, %106 : vector<16x4xi1>, vector<16x4xf32>
    %cst_35 = arith.constant dense<0xFF800000> : vector<4xf32>
    %108 = vector.multi_reduction <maximumf>, %107, %cst_35 [0] : vector<16x4xf32> to vector<4xf32>
    %109 = vector.shape_cast %108 : vector<4xf32> to vector<1x4xf32>
    %cst_36 = arith.constant 0xFF800000 : f32
    %110 = vector.shape_cast %37 : vector<16x1xi1> to vector<16x1xi1>
    %111 = vector.broadcast %110 : vector<16x1xi1> to vector<16x4xi1>
    %112 = vector.broadcast %cst_36 : f32 to vector<16x4xf32>
    %113 = arith.select %111, %91, %112 : vector<16x4xi1>, vector<16x4xf32>
    %cst_37 = arith.constant dense<0xFF800000> : vector<4xf32>
    %114 = vector.multi_reduction <maximumf>, %113, %cst_37 [0] : vector<16x4xf32> to vector<4xf32>
    %115 = vector.shape_cast %114 : vector<4xf32> to vector<1x4xf32>
    %c3_38 = arith.constant 3 : index
    %c0_39 = arith.constant 0 : index
    %c0_40 = arith.constant 0 : index
    %116 = vector.load %arg9[%c3_38, %c0_39, %c0_40] : memref<4x16x4xf32, #tpu.memory_space<vmem>>, vector<1x16x4xf32>
    %117 = vector.shape_cast %116 : vector<1x16x4xf32> to vector<16x4xf32>
    %cst_41 = arith.constant 0xFF800000 : f32
    %118 = vector.shape_cast %10 : vector<16x1xi1> to vector<16x1xi1>
    %119 = vector.broadcast %118 : vector<16x1xi1> to vector<16x4xi1>
    %120 = vector.broadcast %cst_41 : f32 to vector<16x4xf32>
    %121 = arith.select %119, %117, %120 : vector<16x4xi1>, vector<16x4xf32>
    %cst_42 = arith.constant dense<0xFF800000> : vector<4xf32>
    %122 = vector.multi_reduction <maximumf>, %121, %cst_42 [0] : vector<16x4xf32> to vector<4xf32>
    %123 = vector.shape_cast %122 : vector<4xf32> to vector<1x4xf32>
    %cst_43 = arith.constant 0xFF800000 : f32
    %124 = vector.shape_cast %19 : vector<16x1xi1> to vector<16x1xi1>
    %125 = vector.broadcast %124 : vector<16x1xi1> to vector<16x4xi1>
    %126 = vector.broadcast %cst_43 : f32 to vector<16x4xf32>
    %127 = arith.select %125, %117, %126 : vector<16x4xi1>, vector<16x4xf32>
    %cst_44 = arith.constant dense<0xFF800000> : vector<4xf32>
    %128 = vector.multi_reduction <maximumf>, %127, %cst_44 [0] : vector<16x4xf32> to vector<4xf32>
    %129 = vector.shape_cast %128 : vector<4xf32> to vector<1x4xf32>
    %cst_45 = arith.constant 0xFF800000 : f32
    %130 = vector.shape_cast %28 : vector<16x1xi1> to vector<16x1xi1>
    %131 = vector.broadcast %130 : vector<16x1xi1> to vector<16x4xi1>
    %132 = vector.broadcast %cst_45 : f32 to vector<16x4xf32>
    %133 = arith.select %131, %117, %132 : vector<16x4xi1>, vector<16x4xf32>
    %cst_46 = arith.constant dense<0xFF800000> : vector<4xf32>
    %134 = vector.multi_reduction <maximumf>, %133, %cst_46 [0] : vector<16x4xf32> to vector<4xf32>
    %135 = vector.shape_cast %134 : vector<4xf32> to vector<1x4xf32>
    %cst_47 = arith.constant 0xFF800000 : f32
    %136 = vector.shape_cast %37 : vector<16x1xi1> to vector<16x1xi1>
    %137 = vector.broadcast %136 : vector<16x1xi1> to vector<16x4xi1>
    %138 = vector.broadcast %cst_47 : f32 to vector<16x4xf32>
    %139 = arith.select %137, %117, %138 : vector<16x4xi1>, vector<16x4xf32>
    %cst_48 = arith.constant dense<0xFF800000> : vector<4xf32>
    %140 = vector.multi_reduction <maximumf>, %139, %cst_48 [0] : vector<16x4xf32> to vector<4xf32>
    %141 = vector.shape_cast %140 : vector<4xf32> to vector<1x4xf32>
    %142 = tpu.concatenate %45, %51, %57, %63, %71, %77, %83, %89, %97, %103, %109, %115, %123, %129, %135, %141 in 0 : vector<1x4xf32>, vector<1x4xf32>, vector<1x4xf32>, vector<1x4xf32>, vector<1x4xf32>, vector<1x4xf32>, vector<1x4xf32>, vector<1x4xf32>, vector<1x4xf32>, vector<1x4xf32>, vector<1x4xf32>, vector<1x4xf32>, vector<1x4xf32>, vector<1x4xf32>, vector<1x4xf32>, vector<1x4xf32> -> vector<16x4xf32>
    %c0_49 = arith.constant 0 : index
    %c0_50 = arith.constant 0 : index
    %c0_51 = arith.constant 0 : index
    %143 = vector.load %arg8[%c0_49, %c0_50, %c0_51] : memref<1x16x4xf32, #tpu.memory_space<vmem>>, vector<1x16x4xf32>
    %144 = vector.shape_cast %143 : vector<1x16x4xf32> to vector<16x4xf32>
    %145 = vector.shape_cast %142 : vector<16x4xf32> to vector<1x16x4xf32>
    tpu.vector_store %arg8[%c0_49, %c0_50, %c0_51], %145 {strides = array<i32>} : memref<1x16x4xf32, #tpu.memory_space<vmem>>, vector<1x16x4xf32>,
    return
  }
  func.func @transform_0(%arg0: i32, %arg1: i32, %arg2: memref<4xi32, #tpu.memory_space<smem>>, %arg3: memref<4x4xi32, #tpu.memory_space<smem>>, %arg4: memref<4x4xi32, #tpu.memory_space<smem>>, %arg5: memref<4x4xi32, #tpu.memory_space<smem>>, %arg6: memref<4x4xi32, #tpu.memory_space<smem>>) -> (i32, i32, i32, i32) {
    %0 = arith.index_cast %arg1 : i32 to index
    %1 = memref.load %arg2[%0] : memref<4xi32, #tpu.memory_space<smem>>
    %c0_i32 = arith.constant 0 : i32
    %c0_i32_0 = arith.constant 0 : i32
    %c0_i32_1 = arith.constant 0 : i32
    return %1, %c0_i32, %c0_i32_0, %arg0 : i32, i32, i32, i32
  }
  func.func @transform_1(%arg0: i32, %arg1: i32, %arg2: memref<4xi32, #tpu.memory_space<smem>>, %arg3: memref<4x4xi32, #tpu.memory_space<smem>>, %arg4: memref<4x4xi32, #tpu.memory_space<smem>>, %arg5: memref<4x4xi32, #tpu.memory_space<smem>>, %arg6: memref<4x4xi32, #tpu.memory_space<smem>>) -> (i32, i32, i32) {
    %c0_i32 = arith.constant 0 : i32
    %c0_i32_0 = arith.constant 0 : i32
    return %arg1, %c0_i32, %arg0 : i32, i32, i32
  }
}

</mosaic_0001>

<bundles_post_ra>
// kernel: tpu_custom_call.1
= control target key start
LH: loop header
LB: loop body
LE: loop exit
PB: predicated region body
PF: predicated region fallthrough
CT: control target
= control target key end

     0   :  { %s844_s27 = smov [#allocation4]   ;;  %s845_s28 = smov [#allocation5]   ;;  %s1135_s0 = inlined_call_operand.vmem [shape: s32[4], index: 0, kind: input, shape index: {}]   ;;  %s1136_s5 = inlined_call_operand.vmem [shape: f32[2,16,16,4], index: 5, kind: input, shape index: {}]   ;;  %s1137_s6 = inlined_call_operand.vmem [shape: f32[4,16,4], index: 6, kind: output, shape index: {}]   ;;  %s1138_s1 = inlined_call_operand.vmem [shape: s32[4,4], index: 1, kind: input, shape index: {}]   ;;  %s1139_s2 = inlined_call_operand.vmem [shape: s32[4,4], index: 2, kind: input, shape index: {}]   ;;  %s1140_s3 = inlined_call_operand.vmem [shape: s32[4,4], index: 3, kind: input, shape index: {}]   ;;  %s1141_s4 = inlined_call_operand.vmem [shape: s32[4,4], index: 4, kind: input, shape index: {}]  }
   0x1   :  { %s12_s23 = sshll.u32 %s1135_s0, 4  ;;  %s17_s26 = sshll.u32 %s1138_s1, 4  ;;  %s13_s23 = int_to_ptr.vmem [resolvable:$true] %s12_s23  ;;  %s18_s26 = int_to_ptr.vmem [resolvable:$true] %s17_s26 }
   0x2   :  { %15 = dma.vmem_to_smem %s13_s23, 16, %s844_s27, [#allocation3] }
   0x3   :  { %20 = dma.vmem_to_smem %s18_s26, 64, %s845_s28, [#allocation3] }
   0x4   :  { %s22_s7 = sshll.u32 %s1139_s2, 4  ;;  %s27_s10 = sshll.u32 %s1140_s3, 4  ;;  %s23_s7 = int_to_ptr.vmem [resolvable:$true] %s22_s7  ;;  %s28_s10 = int_to_ptr.vmem [resolvable:$true] %s27_s10 }
   0x5   :  { %s846_s0 = smov [#allocation6]   ;;  %s847_s11 = smov [#allocation7]  }
   0x6   :  { %25 = dma.vmem_to_smem %s23_s7, 64, %s846_s0, [#allocation3] }
   0x7   :  { %30 = dma.vmem_to_smem %s28_s10, 64, %s847_s11, [#allocation3] }
   0x8   :  { %s32_s13 = sshll.u32 %s1141_s4, 4  ;;  %s848_s14 = smov [#allocation8]   ;;  %s33_s13 = int_to_ptr.vmem [resolvable:$true] %s32_s13 }
   0x9   :  { %35 = dma.vmem_to_smem %s33_s13, 64, %s848_s14, [#allocation3] }
   0xa   :  { %806 = dma.done.wait [#allocation3], 272 }
   0xb   :  { %807 = vsyncadd [#allocation3], 4294967024 }
   0xc   :  { %38 = sfence }
   0xd   :  { %s899_s2 = smov 0   ;;  %s901_s15 = smov 0  }
   0xe   :  { %s903_s3 = smov 0  }
   0xf LB: > { %s53_s4 = sadd.s32 1, %s814_s15  ;;  %p612_p0 = scmp.ge.s32.totalorder %s818_s3, 1  ;;  %s818_s3 = sphi %s903_s3, %s44_s3   ;;  %s814_s15 = sphi %s901_s15, %s1159_s15   ;;  %s810_s2 = sphi %s899_s2, %s1158_s2  }
  0x10   : > { %p54_p1 = scmp.ge.s32.totalorder %s53_s4, 4  ;;  %p143_p2 = scmp.lt.s32.totalorder %s818_s3, 5 }
  0x12   : > { %s1161_s4 = smov (%p54_p1, %s53_s4), 0  ;;  %p144_p3 = pnand %p612_p0, %p143_p2 }
  0x13   : > { %s170_s16 = sld [smem:[#allocation4 + %s810_s2]] (!%p144_p3)  ;;  %p180_p4 = scmp.lt.s32.totalorder (!%p144_p3), %s810_s2, 3 }
  0x14   : > { %147 = sbr.rel (%p144_p3) target bundleno = 129 (0x81), region = 24  ;;  %s932_s26 = smov (!%p144_p3), 0  }
  0x19   : > { %s181_s17 = scalar_select %p180_p4, %s810_s2, 3 }
  0x1a   : > { %p171_p5 = scmp.lt.s32.totalorder %s170_s16, 1 }
  0x1b   : > { %s626_s18 = sshll.u32 %s181_s17, 4 }
  0x1c   : > { %s925_s21 = scalar_lea.vmem %s1137_s6, %s626_s18  ;;  %s1163_s16 = smov (!%p171_p5, %s170_s16), 1 }
  0x1d   : > { %s625_s22 = sshll.u32 %s1163_s16, 8 }
  0x1e   : > { %s930_s25 = scalar_lea.vmem %s1136_s5, %s625_s22 }
  0x1f LB: >> { %s194_s27 = sshra.s32 %s810_s2, 7  ;;  %s939_s28 = sand.u32 127, %s810_s2  ;;  %v836_v0 = vmov -inf   ;;  %v840_v1 = vmov -inf   ;;  %s822_s26 = sphi %s932_s26, %s193_s26  }
  0x20   : >> { %s196_s29 = sadd.s32 %s822_s26, %s194_s27 }
  0x21   : >> { %s617_s30 = sshll.u32 %s196_s29, 7 }
  0x22   : >> { %s200_s7 = sadd.s32 %s617_s30, %s939_s28 }
  0x23   : >> { %s201_s8 = sld [smem:[#allocation5 + %s200_s7]]  }
  0x24   : >> { %s202_s9 = sld [smem:[#allocation6 + %s200_s7]] }
  0x2a   : >> { %p565_p6 = scmp.ge.s32.totalorder %s201_s8, %s202_s9 }
  0x2b   : >> { %s832_s10 = smov (!%p565_p6), %s201_s8  }
  0x2c   : >> { %568 = sbr.rel (%p565_p6) target bundleno = 58 (0x3a), region = 67 }
  0x31   : >> { %v824_v2 = vmov -inf   ;;  %v828_v3 = vmov -inf  }
  0x32 LB: >>> { %s618_s0 = sshll.u32 %s834_s10, 4  ;;  %s206_s10 = sadd.s32 1, %s834_s10   ;;  %s834_s10 = sphi %s832_s10, %s206_s10   ;;  %v830_v3 = vphi %v828_v3, %v829_v3   ;;  %v826_v2 = vphi %v824_v2, %v825_v2  }
  0x33   : >>> { %s212_s11 = scalar_lea.vmem %s930_s25, %s618_s0  ;;  %p205_p7 = scmp.ge.s32.totalorder %s206_s10, %s202_s9 }
  0x34   : >>> { %v213_v4 = vld [vmem:[%s212_s11] sm:$0xff]  ;;  %v214_v5 = vld [vmem:[%s212_s11 + $0x8] sm:$0xff] }
  0x35   : >>> { %v215_v6 = vmax.f32 %v830_v3, %v213_v4   ;;  %v216_v7 = vmax.f32 %v826_v2, %v214_v5   ;;  %208 = sbr.rel (!%p205_p7) target bundleno = 50 (0x32), region = 73 }
  0x37   : >>> { %v825_v2 = vmov %v216_v7   ;;  %v829_v3 = vmov %v215_v6   ;;  %v837_v0 = vmov (%p205_p7), %v216_v7   ;;  %v841_v1 = vmov (%p205_p7), %v215_v6  }
  0x3a PF: >> { %s619_s1 = sshll.u32 %s822_s26, 4  ;;  %vm219_vm0 = vcmask 31744   ;;  %s193_s26 = sadd.s32 1, %s822_s26   ;;  %v842_v1 = vphi %v840_v1, %v841_v1   ;;  %v838_v0 = vphi %v836_v0, %v837_v0  }
  0x3b   : >> { %s218_s12 = scalar_lea.vmem [#allocation2], %s619_s1  ;;  %p190_p8 = scmp.ge.s32.totalorder %s193_s26, 4  }
  0x3c   : >> { %220 = vst.msk [vmem:[%s218_s12] sm:$0xff] %vm219_vm0, %v842_v1  ;;  %v222_v8 = vlaneseq (%p190_p8)  ;;  %s225_s13 = sld [smem:[#allocation7 + %s810_s2]] (%p190_p8)  ;;  %s627_s14 = sshll.u32 (%p190_p8), %s194_s27, 7 }
  0x3d   : >> { %221 = vst.msk [vmem:[%s218_s12 + $0x8] sm:$0xff] %vm219_vm0, %v838_v0  ;;  %192 = sbr.rel (!%p190_p8) target bundleno = 31 (0x1f), region = 84  ;;  %s226_s16 = sld [smem:[#allocation8 + %s810_s2]] (%p190_p8) }
  0x3e   : > { %s628_s17 = sadd.s32 (%p190_p8), 128, %s627_s14  ;;  %v223_v9 = vshrl.u32 (%p190_p8), %v222_v8, 7  ;;  %s630_s19 = sadd.s32 (%p190_p8), 256, %s627_s14 }
  0x3f   : > { %s241_s18 = sadd.s32 (%p190_p8), %s628_s17, %s939_s28  ;;  %s254_s22 = sadd.s32 (%p190_p8), %s630_s19, %s939_s28 }
  0x40   : > { %s242_s20 = sld [smem:[#allocation7 + %s241_s18]] (%p190_p8)  ;;  %v224_v10 = vadd.s32 (%p190_p8), 8, %v223_v9  ;;  %s632_s24 = sadd.s32 (%p190_p8), 384, %s627_s14 }
  0x41   : > { %s243_s23 = sld [smem:[#allocation8 + %s241_s18]] (%p190_p8)  ;;  %s267_s26 = sadd.s32 (%p190_p8), %s632_s24, %s939_s28 }
  0x42   : > { %s255_s25 = sld [smem:[#allocation7 + %s254_s22]]  ;;  %v227_v11 = vstv %s225_s13 }
  0x43   : > { %s256_s29 = sld [smem:[#allocation8 + %s254_s22]]  ;;  %vm228_vm1 = vcmp.ge.s32.totalorder %v223_v9, %v227_v11  ;;  %vm229_vm2 = vcmp.ge.s32.totalorder %v224_v10, %v227_v11  ;;  %v230_v12 = vstv %s226_s16 }
  0x44   : > { %s268_s30 = sld [smem:[#allocation7 + %s267_s26]]  ;;  %v278_v13 = vld [vmem:[#allocation2] sm:$0xff]  ;;  %vm231_vm3 = vcmp.lt.s32.totalorder %v223_v9, %v230_v12  ;;  %vm232_vm4 = vcmp.lt.s32.totalorder %v224_v10, %v230_v12  ;;  %v279_v14 = vld [vmem:[#allocation2 + $0x8] sm:$0xff]  ;;  %v342_v39 = vld [vmem:[#allocation2 + $0x10] sm:$0xff] }
  0x45   : > { %s269_s2 = sld [smem:[#allocation8 + %s267_s26]]  ;;  %vm959_vm5 = vmand %vm228_vm1, %vm231_vm3  ;;  %v343_v45 = vld [vmem:[#allocation2 + $0x18] sm:$0xff] }
  0x46   : > { %v244_v16 = vstv %s242_s20  ;;  %vm963_vm6 = vmand %vm229_vm2, %vm232_vm4  ;;  %v284_v19 = vsel %vm959_vm5, %v278_v13, -inf  ;;  %v344_v53 = vsel %vm959_vm5, %v342_v39, -inf }
  0x47   : > { %vm245_vm7 = vcmp.ge.s32.totalorder %v223_v9, %v244_v16  ;;  %vm246_vm8 = vcmp.ge.s32.totalorder %v224_v10, %v244_v16  ;;  %v247_v18 = vstv %s243_s23  ;;  %v285_v21 = vsel %vm963_vm6, %v279_v14, -inf }
  0x48   : > { %vm248_vm9 = vcmp.lt.s32.totalorder %v223_v9, %v247_v18  ;;  %vm249_vm10 = vcmp.lt.s32.totalorder %v224_v10, %v247_v18  ;;  %v257_v20 = vstv %s255_s25  ;;  %v287_v24 = vsel %vm219_vm0, %v284_v19, -inf }
  0x49   : > { %vm971_vm11 = vmand %vm245_vm7, %vm248_vm9  ;;  %vm258_vm12 = vcmp.ge.s32.totalorder %v223_v9, %v257_v20  ;;  %vm259_vm13 = vcmp.ge.s32.totalorder %v224_v10, %v257_v20  ;;  %v260_v23 = vstv %s256_s29  ;;  %v288_v27 = vsel %vm219_vm0, %v285_v21, -inf }
  0x4a   : > { %vm976_vm14 = vmand %vm246_vm8, %vm249_vm10  ;;  %vm261_vm15 = vcmp.lt.s32.totalorder %v223_v9, %v260_v23  ;;  %vm262_vm1 = vcmp.lt.s32.totalorder %v224_v10, %v260_v23  ;;  %v270_v26 = vstv %s268_s30  ;;  %v289_v30 = vmax.f32 %v287_v24, %v288_v27 }
  0x4b   : > { %vm981_vm2 = vmand %vm258_vm12, %vm261_vm15  ;;  %vm271_vm3 = vcmp.ge.s32.totalorder %v223_v9, %v270_v26  ;;  %vm272_vm4 = vcmp.ge.s32.totalorder %v224_v10, %v270_v26  ;;  %v273_v29 = vstv %s269_s2  ;;  %v300_v32 = vsel %vm971_vm11, %v278_v13, -inf }
  0x4c   : > { %vm985_vm7 = vmand %vm259_vm13, %vm262_vm1  ;;  %vm274_vm8 = vcmp.lt.s32.totalorder %v223_v9, %v273_v29  ;;  %vm275_vm9 = vcmp.lt.s32.totalorder %v224_v10, %v273_v29  ;;  %v301_v33 = vsel %vm976_vm14, %v279_v14, -inf  ;;  %v290_v35 = vrot.slane %v289_v30, 4 }
  0x4d   : > { %vm993_vm10 = vmand %vm271_vm3, %vm274_vm8  ;;  %v302_v36 = vsel %vm219_vm0, %v300_v32, -inf  ;;  %v303_v37 = vsel %vm219_vm0, %v301_v33, -inf  ;;  %v315_v38 = vsel %vm981_vm2, %v278_v13, -inf  ;;  %v316_v42 = vsel %vm985_vm7, %v279_v14, -inf }
  0x4e   : > { %vm1001_vm12 = vmand %vm272_vm4, %vm275_vm9  ;;  %v304_v41 = vmax.f32 %v302_v36, %v303_v37  ;;  %v317_v43 = vsel %vm219_vm0, %v315_v38, -inf  ;;  %v330_v44 = vsel %vm993_vm10, %v278_v13, -inf  ;;  %v291_v46 = vmax.f32 %v289_v30, %v290_v35  ;;  %v389_v30 = vld [vmem:[#allocation2 + $0x20] sm:$0xff] }
  0x4f   : > { %v318_v47 = vsel %vm219_vm0, %v316_v42, -inf  ;;  %v331_v48 = vsel %vm1001_vm12, %v279_v14, -inf  ;;  %v332_v49 = vsel %vm219_vm0, %v330_v44, -inf  ;;  %v345_v56 = vsel %vm963_vm6, %v343_v45, -inf }
  0x50   : > { %v305_v50 = vrot.slane %v304_v41, 4  ;;  %v319_v51 = vmax.f32 %v317_v43, %v318_v47  ;;  %v333_v52 = vsel %vm219_vm0, %v331_v48, -inf  ;;  %v292_v54 = vrot.slane %v291_v46, 2  ;;  %v390_v43 = vld [vmem:[#allocation2 + $0x28] sm:$0xff] }
  0x51   : > { %v334_v55 = vmax.f32 %v332_v49, %v333_v52  ;;  %v346_v57 = vsel %vm219_vm0, %v344_v53, -inf  ;;  %v347_v60 = vsel %vm219_vm0, %v345_v56, -inf  ;;  %v355_v61 = vsel %vm971_vm11, %v342_v39, -inf }
  0x52   : > { %v306_v58 = vmax.f32 %v304_v41, %v305_v50  ;;  %v320_v59 = vrot.slane %v319_v51, 4  ;;  %v293_v62 = vmax.f32 %v291_v46, %v292_v54  ;;  %v348_v0 = vmax.f32 %v346_v57, %v347_v60 }
  0x53   : > { %v335_v63 = vrot.slane %v334_v55, 4  ;;  %v356_v1 = vsel %vm976_vm14, %v343_v45, -inf  ;;  %v357_v4 = vsel %vm219_vm0, %v355_v61, -inf  ;;  %v366_v12 = vsel %vm981_vm2, %v342_v39, -inf }
  0x54   : > { %v307_v2 = vrot.slane %v306_v58, 2  ;;  %v321_v3 = vmax.f32 %v319_v51, %v320_v59  ;;  %v358_v5 = vsel %vm219_vm0, %v356_v1, -inf  ;;  %v294_v6 = vrot.slane %v293_v62, 1 }
  0x55   : > { %v336_v7 = vmax.f32 %v334_v55, %v335_v63  ;;  %v349_v8 = vrot.slane %v348_v0, 4  ;;  %v359_v9 = vmax.f32 %v357_v4, %v358_v5  ;;  %v367_v13 = vsel %vm985_vm7, %v343_v45, -inf }
  0x56   : > { %v308_v10 = vmax.f32 %v306_v58, %v307_v2  ;;  %v322_v11 = vrot.slane %v321_v3, 2  ;;  %v368_v21 = vsel %vm219_vm0, %v366_v12, -inf  ;;  %v369_v23 = vsel %vm219_vm0, %v367_v13, -inf }
  0x57   : > { %v337_v14 = vrot.slane %v336_v7, 2  ;;  %v350_v16 = vmax.f32 %v348_v0, %v349_v8  ;;  %v360_v18 = vrot.slane %v359_v9, 4  ;;  %v370_v29 = vmax.f32 %v368_v21, %v369_v23 }
  0x58   : > { %v309_v19 = vrot.slane %v308_v10, 1  ;;  %v323_v20 = vmax.f32 %v321_v3, %v322_v11  ;;  %v1033_v32 = vmax.f32 %v293_v62, %v294_v6  ;;  %v377_v35 = vsel %vm993_vm10, %v342_v39, -inf }
  0x59   : > { %v338_v24 = vmax.f32 %v336_v7, %v337_v14  ;;  %v351_v26 = vrot.slane %v350_v16, 2  ;;  %v361_v27 = vmax.f32 %v359_v9, %v360_v18  ;;  %v378_v36 = vsel %vm1001_vm12, %v343_v45, -inf  ;;  %v436_v7 = vld [vmem:[#allocation2 + $0x30] sm:$0xff]  ;;  %v437_v18 = vld [vmem:[#allocation2 + $0x38] sm:$0xff] }
  0x5a   : > { %v324_v33 = vrot.slane %v323_v20, 1  ;;  %v371_v42 = vrot.slane %v370_v29, 4  ;;  %v1039_v44 = vmax.f32 %v308_v10, %v309_v19  ;;  %v379_v46 = vsel %vm219_vm0, %v377_v35, -inf }
  0x5b   : > { %v339_v37 = vrot.slane %v338_v24, 1  ;;  %v352_v38 = vmax.f32 %v350_v16, %v351_v26  ;;  %v362_v41 = vrot.slane %v361_v27, 2  ;;  %v380_v47 = vsel %vm219_vm0, %v378_v36, -inf }
  0x5c   : > { %v391_v48 = vsel %vm959_vm5, %v389_v30, -inf  ;;  %v1045_v49 = vmax.f32 %v323_v20, %v324_v33  ;;  %v372_v51 = vmax.f32 %v370_v29, %v371_v42  ;;  %v381_v45 = vmax.f32 %v379_v46, %v380_v47 }
  0x5d   : > { %v353_v39 = vrot.slane %v352_v38, 1  ;;  %v363_v50 = vmax.f32 %v361_v27, %v362_v41  ;;  %v392_v52 = vsel %vm963_vm6, %v390_v43, -inf  ;;  %v393_v53 = vsel %vm219_vm0, %v391_v48, -inf }
  0x5e   : > { %v402_v54 = vsel %vm971_vm11, %v389_v30, -inf  ;;  %v1052_v55 = vmax.f32 %v338_v24, %v339_v37  ;;  %v373_v57 = vrot.slane %v372_v51, 2  ;;  %v394_v58 = vsel %vm219_vm0, %v392_v52, -inf }
  0x5f   : > { %v364_v56 = vrot.slane %v363_v50, 1  ;;  %v382_v59 = vrot.slane %v381_v45, 4  ;;  %v395_v60 = vmax.f32 %v393_v53, %v394_v58  ;;  %v403_v61 = vsel %vm976_vm14, %v390_v43, -inf }
  0x60   : > { %v404_v62 = vsel %vm219_vm0, %v402_v54, -inf  ;;  %v1058_v63 = vmax.f32 %v352_v38, %v353_v39  ;;  %v374_v0 = vmax.f32 %v372_v51, %v373_v57  ;;  %v405_v1 = vsel %vm219_vm0, %v403_v61, -inf }
  0x61   : > { %v413_v2 = vsel %vm981_vm2, %v389_v30, -inf  ;;  %v383_v3 = vmax.f32 %v381_v45, %v382_v59  ;;  %v396_v4 = vrot.slane %v395_v60, 4  ;;  %v406_v5 = vmax.f32 %v404_v62, %v405_v1 }
  0x62   : > { %v414_v6 = vsel %vm985_vm7, %v390_v43, -inf  ;;  %v1065_v8 = vmax.f32 %v363_v50, %v364_v56  ;;  %v415_v9 = vsel %vm219_vm0, %v413_v2, -inf  ;;  %v424_v11 = vsel %vm993_vm10, %v389_v30, -inf }
  0x63   : > { %v416_v10 = vsel %vm219_vm0, %v414_v6, -inf  ;;  %v384_v12 = vrot.slane %v383_v3, 2  ;;  %v397_v13 = vmax.f32 %v395_v60, %v396_v4  ;;  %v407_v14 = vrot.slane %v406_v5, 4 }
  0x64   : > { %v417_v16 = vmax.f32 %v415_v9, %v416_v10  ;;  %v375_v19 = vrot.slane %v374_v0, 1  ;;  %v425_v20 = vsel %vm1001_vm12, %v390_v43, -inf  ;;  %v426_v21 = vsel %vm219_vm0, %v424_v11, -inf }
  0x65   : > { %v438_v23 = vsel %vm959_vm5, %v436_v7, -inf  ;;  %v385_v24 = vmax.f32 %v383_v3, %v384_v12  ;;  %v398_v26 = vrot.slane %v397_v13, 2  ;;  %v408_v27 = vmax.f32 %v406_v5, %v407_v14 }
  0x66   : > { %v418_v29 = vrot.slane %v417_v16, 4  ;;  %v427_v30 = vsel %vm219_vm0, %v425_v20, -inf  ;;  %v439_v33 = vsel %vm963_vm6, %v437_v18, -inf  ;;  %v440_v35 = vsel %vm219_vm0, %v438_v23, -inf }
  0x67   : > { %v449_v36 = vsel %vm971_vm11, %v436_v7, -inf  ;;  %v386_v37 = vrot.slane %v385_v24, 1  ;;  %v399_v38 = vmax.f32 %v397_v13, %v398_v26  ;;  %v409_v41 = vrot.slane %v408_v27, 2 }
  0x68   : > { %v419_v42 = vmax.f32 %v417_v16, %v418_v29  ;;  %v428_v15 = vmax.f32 %v426_v21, %v427_v30  ;;  %v441_v43 = vsel %vm219_vm0, %v439_v33, -inf  ;;  %v450_v46 = vsel %vm976_vm14, %v437_v18, -inf }
  0x69   : > { %v451_v47 = vsel %vm219_vm0, %v449_v36, -inf  ;;  %v1086_v48 = vmax.f32 %v374_v0, %v375_v19  ;;  %v400_v17 = vrot.slane %v399_v38, 1  ;;  %v410_v39 = vmax.f32 %v408_v27, %v409_v41 }
  0x6a   : > { %v420_v50 = vrot.slane %v419_v42, 2  ;;  %v429_v51 = vrot.slane %v428_v15, 4  ;;  %v442_v22 = vmax.f32 %v440_v35, %v441_v43  ;;  %v452_v45 = vsel %vm219_vm0, %v450_v46, -inf }
  0x6b   : > { %v460_v52 = vsel %vm981_vm2, %v436_v7, -inf  ;;  %v387_v53 = vmax.f32 %v385_v24, %v386_v37  ;;  %v411_v54 = vrot.slane %v410_v39, 1  ;;  %v453_v57 = vmax.f32 %v451_v47, %v452_v45 }
  0x6c   : > { %v421_v56 = vmax.f32 %v419_v42, %v420_v50  ;;  %v430_v25 = vmax.f32 %v428_v15, %v429_v51  ;;  %v443_v58 = vrot.slane %v442_v22, 4  ;;  %v461_v59 = vsel %vm985_vm7, %v437_v18, -inf }
  0x6d   : > { %v462_v60 = vsel %vm219_vm0, %v460_v52, -inf  ;;  %v401_v61 = vmax.f32 %v399_v38, %v400_v17  ;;  %v412_v62 = vmax.f32 %v410_v39, %v411_v54  ;;  %v454_v0 = vrot.slane %v453_v57, 4 }
  0x6e   : > { %v463_v1 = vsel %vm219_vm0, %v461_v59, -inf  ;;  %v431_v2 = vrot.slane %v430_v25, 2  ;;  %v444_v3 = vmax.f32 %v442_v22, %v443_v58  ;;  %v471_v4 = vsel %vm993_vm10, %v436_v7, -inf }
  0x6f   : > { %v464_v28 = vmax.f32 %v462_v60, %v463_v1  ;;  %v422_v5 = vrot.slane %v421_v56, 1  ;;  %v455_v6 = vmax.f32 %v453_v57, %v454_v0  ;;  %v472_v9 = vsel %vm1001_vm12, %v437_v18, -inf }
  0x70   : > { %v473_v31 = vsel %vm219_vm0, %v471_v4, -inf  ;;  %v432_v10 = vmax.f32 %v430_v25, %v431_v2  ;;  %v445_v11 = vrot.slane %v444_v3, 2  ;;  %v474_v13 = vsel %vm219_vm0, %v472_v9, -inf }
  0x71   : > { %v465_v12 = vrot.slane %v464_v28, 4  ;;  %v456_v14 = vrot.slane %v455_v6, 2  ;;  %v475_v16 = vmax.f32 %v473_v31, %v474_v13  ;;  %vm482_vm5 = vcmask 1040384  }
  0x72   : > { %vm484_vm6 = vcmask 1041408   ;;  %v433_v19 = vrot.slane %v432_v10, 1  ;;  %v446_v20 = vmax.f32 %v444_v3, %v445_v11  ;;  %v483_v7 = vsel %vm482_vm5, %v1033_v32, %v1039_v44 }
  0x73   : > { %v466_v34 = vmax.f32 %v464_v28, %v465_v12  ;;  %v457_v40 = vmax.f32 %v455_v6, %v456_v14  ;;  %v476_v18 = vrot.slane %v475_v16, 4  ;;  %v485_v21 = vsel %vm484_vm6, %v483_v7, %v1045_v49 }
  0x74   : > { %vm486_vm11 = vcmask 1042432   ;;  %v423_v23 = vmax.f32 %v421_v56, %v422_v5  ;;  %v447_v24 = vrot.slane %v446_v20, 1  ;;  %vm488_vm13 = vcmask 1043456  }
  0x75   : > { %v467_v26 = vrot.slane %v466_v34, 2  ;;  %v487_v27 = vsel %vm486_vm11, %v485_v21, %v1052_v55  ;;  %v458_v29 = vrot.slane %v457_v40, 1  ;;  %v477_v30 = vmax.f32 %v475_v16, %v476_v18 }
  0x76   : > { %vm490_vm14 = vcmask 1044480   ;;  %v434_v33 = vmax.f32 %v432_v10, %v433_v19  ;;  %v489_v32 = vsel %vm488_vm13, %v487_v27, %v1058_v63  ;;  %vm492_vm15 = vcmask 1045504  }
  0x77   : > { %v468_v35 = vmax.f32 %v466_v34, %v467_v26  ;;  %v448_v44 = vmax.f32 %v446_v20, %v447_v24  ;;  %v478_v49 = vrot.slane %v477_v30, 2  ;;  %v491_v36 = vsel %vm490_vm14, %v489_v32, %v1065_v8 }
  0x78   : > { %vm494_vm1 = vcmask 1046528   ;;  %v459_v37 = vmax.f32 %v457_v40, %v458_v29  ;;  %v493_v38 = vsel %vm492_vm15, %v491_v36, %v1086_v48  ;;  %v496_v41 = vsel %vm482_vm5, %v401_v61, %v412_v62 }
  0x79   : > { %v469_v55 = vrot.slane %v468_v35, 1  ;;  %v479_v42 = vmax.f32 %v477_v30, %v478_v49  ;;  %v495_v15 = vsel %vm494_vm1, %v493_v38, %v387_v53  ;;  %v497_v63 = vsel %vm484_vm6, %v496_v41, %v423_v23 }
  0x7a   : > { %v498_v46 = vsel %vm486_vm11, %v497_v63, %v434_v33  ;;  %503 = vst.msk [vmem:[%s925_s21] sm:$0xff] %vm219_vm0, %v495_v15 }
  0x7b   : > { %v470_v43 = vmax.f32 %v468_v35, %v469_v55  ;;  %v480_v8 = vrot.slane %v479_v42, 1  ;;  %v499_v47 = vsel %vm488_vm13, %v498_v46, %v448_v44 }
  0x7c   : > { %v500_v17 = vsel %vm490_vm14, %v499_v47, %v459_v37 }
  0x7d   : > { %v481_v39 = vmax.f32 %v479_v42, %v480_v8  ;;  %v501_v48 = vsel %vm492_vm15, %v500_v17, %v470_v43 }
  0x7f   : > { %v502_v50 = vsel %vm494_vm1, %v501_v48, %v481_v39 }
  0x80   : > { %504 = vst.msk [vmem:[%s925_s21 + $0x8] sm:$0xff] %vm219_vm0, %v502_v50 }
  0x81 PF: > { %s44_s3 = sadd.s32 1, %s818_s3   ;;  %s1158_s2 = smov %s814_s15 }
  0x82   : > { %p41_p9 = scmp.ge.s32.totalorder %s44_s3, 6   ;;  %s1159_s15 = smov %s1161_s4 }
  0x84   :  { %43 = sbr.rel (!%p41_p9) target bundleno = 15 (0xf), region = 95 }

</bundles_post_ra>
